<compile_context>
chip_gen: v7x
topology: tpu7x:2x2x1
jax: 0.10.0
libtpu: 0.0.40
codegen_flags: <defaults>
</compile_context>

<pallas_src>
import functools

import jax
import jax.numpy as jnp
from jax.experimental import pallas as pl
from jax.experimental.pallas import tpu as pltpu

_LANE = 128
_SUBLANE = 8


def _leaky_softmax_kernel(x_ref, p_ref, s_ref, *, coeff: float):
    # exp -> one cross-lane row reduction -> reciprocal -> VPU multiply. All in VMEM.
    x = x_ref[...]
    if x.dtype != jnp.float32:
        x = x.astype(jnp.float32)          # reduce in f32 (required on v5e, safe everywhere)
    e = jnp.exp(x)                          # matches torch.exp (no max-shift)
    denom = jnp.sum(e, axis=-1, keepdims=True) + coeff
    inv = pl.reciprocal(denom, approx=False)           # exact; keeps tight tolerances
    p_ref[...] = (e * inv).astype(p_ref.dtype)
    # sum(p) = sum(e)/denom = (denom - coeff)/denom = 1 - coeff/denom
    s_ref[...] = (1.0 - coeff * inv).astype(s_ref.dtype)


def _round_up(v: int, m: int) -> int:
    return (v + m - 1) // m * m


def leaky_softmax(x: jax.Array, coeff: float = 1.0, *,
                  block_rows: int | None = None,
                  vmem_limit_bytes: int | None = None):
    """Pallas equivalent of TorchLeakySoftmax.forward(x); softmax over the last dim."""
    orig_shape = x.shape
    classes = orig_shape[-1]
    rows = 1
    for d in orig_shape[:-1]:
        rows *= d
    x2 = x.reshape(rows, classes)

    itemsize = jnp.dtype(x.dtype).itemsize
    classes_p = _round_up(classes, _LANE)

    if block_rows is None:
        # Target ~4 MiB per input tile (mem-bound roofline flattens around there),
        # multiple of 8 sublanes, capped so double-buffered VMEM fits every chip.
        target = (4 << 20) // (classes_p * itemsize)
        block_rows = max(_SUBLANE, min(4096, target))
    block_rows = max(_SUBLANE, (block_rows // _SUBLANE) * _SUBLANE)
    block_rows = min(block_rows, _round_up(rows, _SUBLANE))

    rows_p = _round_up(rows, block_rows)

    # Pad with -inf: exp(-inf) == 0, so padded classes never touch the denominator
    # and padded rows are sliced away below. Lane-dense classes => unmasked vst.
    if rows_p != rows or classes_p != classes:
        x2 = jnp.pad(x2, ((0, rows_p - rows), (0, classes_p - classes)),
                     constant_values=-jnp.inf)

    if vmem_limit_bytes is None:
        # double-buffered: input tile + p tile + (lane-padded) s tile, with headroom.
        est = 2 * block_rows * (2 * classes_p + _LANE) * itemsize
        vmem_limit_bytes = int(min(max(2 * est, 32 << 20), 48 << 20))

    kernel = functools.partial(_leaky_softmax_kernel, coeff=float(coeff))

    p_pad, s_pad = pl.pallas_call(
        kernel,
        out_shape=(
            jax.ShapeDtypeStruct((rows_p, classes_p), x.dtype),  # probabilities
            jax.ShapeDtypeStruct((rows_p, 1), x.dtype),          # sum over last dim
        ),
        grid_spec=pltpu.PrefetchScalarGridSpec(
            num_scalar_prefetch=0,
            grid=(rows_p // block_rows,),
            in_specs=[
                pl.BlockSpec((block_rows, classes_p), lambda i: (i, 0)),
            ],
            out_specs=[
                pl.BlockSpec((block_rows, classes_p), lambda i: (i, 0)),
                pl.BlockSpec((block_rows, 1), lambda i: (i, 0)),
            ],
        ),
        compiler_params=pltpu.CompilerParams(
            dimension_semantics=("parallel",),   # shards rows across v7x's 2 TCs
            vmem_limit_bytes=vmem_limit_bytes,
        ),
    )(x2)

    p = p_pad[:rows, :classes].reshape(orig_shape)
    s = s_pad[:rows, :].reshape(orig_shape[:-1] + (1,))
    return p, s


def leaky_softmax_ref(x, coeff=1.0):
    e = jnp.exp(x)
    d = jnp.sum(e, axis=-1, keepdims=True) + coeff
    p = e / d
    return p, jnp.sum(p, axis=-1, keepdims=True)


if __name__ == "__main__":
    key = jax.random.PRNGKey(0)
    k1, k2 = jax.random.split(key)

    # Lane-aligned case.
    x1 = jax.random.normal(k1, (32, 128), dtype=jnp.float32)
    p1, s1 = leaky_softmax(x1, coeff=1.0)
    jax.block_until_ready((p1, s1))
    p1r, s1r = leaky_softmax_ref(x1, 1.0)
    assert p1.shape == (32, 128) and s1.shape == (32, 1)
    assert jnp.allclose(p1, p1r, atol=1e-5, rtol=1e-5)
    assert jnp.allclose(s1, s1r, atol=1e-5, rtol=1e-5)

    # Ragged rows / classes (exercises the padding path).
    x2 = jax.random.normal(k2, (13, 40), dtype=jnp.float32)
    p2, s2 = leaky_softmax(x2, coeff=2.5)
    jax.block_until_ready((p2, s2))
    p2r, s2r = leaky_softmax_ref(x2, 2.5)
    assert p2.shape == (13, 40) and s2.shape == (13, 1)
    assert jnp.allclose(p2, p2r, atol=1e-5, rtol=1e-5)
    assert jnp.allclose(s2, s2r, atol=1e-5, rtol=1e-5)

    # Docstring sanity check: zeros over 9 classes -> probability 0.1 each, sum 0.9.
    z = jnp.zeros((3, 9), dtype=jnp.float32)
    pz, sz = leaky_softmax(z, coeff=1.0)
    jax.block_until_ready((pz, sz))
    assert jnp.allclose(pz, 0.1, atol=1e-6)
    assert jnp.allclose(sz, 0.9, atol=1e-6)

    # TODO(synk): no max-subtraction before exp (matches torch.exp semantics exactly);
    # logits >~ 88 in f32 overflow just like the PyTorch reference.
    print("KERNEL_OK")
</pallas_src>

<mosaic_0001>
module attributes {stable_mosaic.version = 11 : i64} {
  func.func @_leaky_softmax_kernel(%arg0: i32, %arg1: memref<32x128xf32, #tpu.memory_space<vmem>>, %arg2: memref<32x128xf32, #tpu.memory_space<vmem>>, %arg3: memref<32x1xf32, #tpu.memory_space<vmem>>) attributes {dimension_semantics = [#tpu.dimension_semantics<parallel>], iteration_bounds = array<i64: 1>, scalar_prefetch = 0 : i64, scratch_operands = 0 : i64, tpu.core_type = #tpu.core_type<tc>, window_params = [{transform_indices = @transform_0, window_bounds = array<i64: 32, 128>}, {transform_indices = @transform_1, window_bounds = array<i64: 32, 128>}, {transform_indices = @transform_2, window_bounds = array<i64: 32, 1>}]} {
    %c0 = arith.constant 0 : index
    %c0_0 = arith.constant 0 : index
    %0 = vector.load %arg1[%c0, %c0_0] : memref<32x128xf32, #tpu.memory_space<vmem>>, vector<32x128xf32>
    %1 = math.exp %0 : vector<32x128xf32>
    %cst = arith.constant dense<0.000000e+00> : vector<32xf32>
    %2 = vector.multi_reduction <add>, %1, %cst [1] : vector<32x128xf32> to vector<32xf32>
    %3 = vector.shape_cast %2 : vector<32xf32> to vector<32x1xf32>
    %cst_1 = arith.constant 1.000000e+00 : f32
    %4 = vector.broadcast %cst_1 : f32 to vector<32x1xf32>
    %5 = arith.addf %3, %4 : vector<32x1xf32>
    %6 = tpu.reciprocal %5 : vector<32x1xf32> -> vector<32x1xf32>
    %7 = vector.broadcast %6 : vector<32x1xf32> to vector<32x128xf32>
    %8 = arith.mulf %1, %7 : vector<32x128xf32>
    %c0_2 = arith.constant 0 : index
    %c0_3 = arith.constant 0 : index
    %9 = vector.load %arg2[%c0_2, %c0_3] : memref<32x128xf32, #tpu.memory_space<vmem>>, vector<32x128xf32>
    tpu.vector_store %arg2[%c0_2, %c0_3], %8 {strides = array<i32>} : memref<32x128xf32, #tpu.memory_space<vmem>>, vector<32x128xf32>,
    %cst_4 = arith.constant 1.000000e+00 : f32
    %10 = vector.broadcast %cst_4 : f32 to vector<32x1xf32>
    %11 = arith.mulf %10, %6 : vector<32x1xf32>
    %cst_5 = arith.constant 1.000000e+00 : f32
    %12 = vector.broadcast %cst_5 : f32 to vector<32x1xf32>
    %13 = arith.subf %12, %11 : vector<32x1xf32>
    %c0_6 = arith.constant 0 : index
    %c0_7 = arith.constant 0 : index
    %14 = vector.load %arg3[%c0_6, %c0_7] : memref<32x1xf32, #tpu.memory_space<vmem>>, vector<32x1xf32>
    tpu.vector_store %arg3[%c0_6, %c0_7], %13 {strides = array<i32>} : memref<32x1xf32, #tpu.memory_space<vmem>>, vector<32x1xf32>,
    return
  }
  func.func @transform_0(%arg0: i32) -> (i32, i32) {
    %c0_i32 = arith.constant 0 : i32
    %c0_i32_0 = arith.constant 0 : i32
    return %arg0, %c0_i32 : i32, i32
  }
  func.func @transform_1(%arg0: i32) -> (i32, i32) {
    %c0_i32 = arith.constant 0 : i32
    %c0_i32_0 = arith.constant 0 : i32
    return %arg0, %c0_i32 : i32, i32
  }
  func.func @transform_2(%arg0: i32) -> (i32, i32) {
    %c0_i32 = arith.constant 0 : i32
    %c0_i32_0 = arith.constant 0 : i32
    return %arg0, %c0_i32 : i32, i32
  }
}

</mosaic_0001>

<bundles_post_ra>
// kernel: tpu_custom_call.1
= control target key start
LH: loop header
LB: loop body
LE: loop exit
PB: predicated region body
PF: predicated region fallthrough
CT: control target
= control target key end

     0   :  { %8 = vsyncpa [#allocation3], 0  ;;  %s224_s0 = inlined_call_operand.hbm [shape: f32[32,128], index: 0, kind: input, shape index: {}]   ;;  %s225_s1 = inlined_call_operand.hbm [shape: f32[32,128], index: 1, kind: output, shape index: {0}]   ;;  %s226_s2 = inlined_call_operand.vmem [shape: f32[32,1], index: 2, kind: output, shape index: {1}]  }
   0x1   :  { %9 = vsyncpa [#allocation4], 0  ;;  %s159_s9 = smov [#allocation2]   ;;  %s111_s13 = scalar_lea.hbm %s224_s0, 512 }
   0x2   :  { %s15_s10 = sshll.u32 %s159_s9, 4  ;;  %p112_p0 = scmp.ne.s32.totalorder %s224_s0, %s111_s13  ;;  %s16_s10 = int_to_ptr.vmem [resolvable:$true] %s15_s10 }
   0x3   :  { %p115_p1 = scmp.lt.u32.totalorder %s111_s13, %s224_s0 }
   0x5   :  { %p117_p2 = pnand %p115_p1, %p112_p0 }
   0x7   :  { %120 = shalt.err (!%p117_p2)
}
   0x8   :  { %s121_s18 = scalar_lea.vmem %s16_s10, 512  ;;  %p126_p4 = scmp.lt.s32.totalorder %s16_s10, %s16_s10 }
   0x9   :  { %p122_p3 = scmp.ne.s32.totalorder %s16_s10, %s121_s18  ;;  %p127_p5 = scmp.lt.s32.totalorder %s121_s18, %s121_s18 }
   0xb   :  { %p128_p6 = por %p127_p5, %p126_p4 }
   0xd   :  { %p129_p7 = pnand %p128_p6, %p122_p3 }
   0xf   :  { %132 = shalt.err (!%p129_p7)
}
  0x10   :  { %s160_s19 = smov 128   ;;  %s161_s20 = smov 8  }
  0x11   :  { %21 = dma.hbm_to_vmem [thread:$0]  %s224_s0, 512, %s16_s10, [#allocation3], %s160_s19, %s160_s19, %s161_s20  }
  0x12   :  { %155 = dma.done.wait [#allocation3], 512  }
  0x13   :  { %156 = vsyncadd [#allocation3], 4294966784  ;;  %v27_v0 = vld [vmem:[#allocation2 + $0x10] sm:$0xff]  ;;  %v25_v1 = vld [vmem:[#allocation2] sm:$0xff]  ;;  %vm65_vm0 = vcmask 7168   ;;  %s162_s24 = smov [#allocation5]  }
  0x14   :  { %v28_v2 = vld [vmem:[#allocation2 + $0x18] sm:$0xff]  ;;  %v33_v3 = vmul.f32 1.442695, %v27_v0  ;;  %v29_v4 = vmul.f32 1.442695, %v25_v1  ;;  %v26_v6 = vld [vmem:[#allocation2 + $0x8] sm:$0xff] }
  0x15   :  { %v35_v5 = vmul.f32 1.442695, %v28_v2  ;;  %v31_v7 = vmul.f32 1.442695, %v26_v6  ;;  %s75_s25 = sshll.u32 %s162_s24, 4  ;;  %s76_s25 = int_to_ptr.vmem [resolvable:$true] %s75_s25 }
  0x16   :  { %95 = vpow2.f32 %v33_v3  ;;  %s133_s4 = scalar_lea.vmem %s76_s25, 512  ;;  %p138_p9 = scmp.lt.s32.totalorder %s76_s25, %s76_s25 }
  0x17   :  { %97 = vpow2.f32 %v29_v4  ;;  %p134_p8 = scmp.ne.s32.totalorder %s76_s25, %s133_s4  ;;  %p139_p10 = scmp.lt.s32.totalorder %s133_s4, %s133_s4 }
  0x18   :  { %99 = vpow2.f32 %v35_v5 }
  0x19   :  { %101 = vpow2.f32 %v31_v7  ;;  %p140_p11 = por %p139_p10, %p138_p9 }
  0x1b   :  { %p141_p12 = pnand %p140_p11, %p134_p8 }
  0x20   :  { %v96_v8 = vpop.eup %95 }
  0x21   :  { %v98_v9 = vpop.eup %97  ;;  %41 = vadd.xlane.f32.xlu1 %v96_v8 }
  0x22   :  { %v100_v10 = vpop.eup %99  ;;  %37 = vadd.xlane.f32.xlu0 %v98_v9 }
  0x23   :  { %v102_v11 = vpop.eup %101 }
  0x25   :  { %43 = vadd.xlane.f32.xlu1 %v100_v10 }
  0x26   :  { %39 = vadd.xlane.f32.xlu0 %v102_v11 }
  0xae   :  { %v42_v12 = vpop.xlane.xlu1 %41 }
  0xaf   :  { %v47_v13 = vadd.f32 1.0, %v42_v12  ;;  %v38_v14 = vpop.xlane.xlu0 %37 }
  0xb0   :  { %v45_v15 = vadd.f32 1.0, %v38_v14 }
  0xb1   :  { %103 = vrcp.f32 %v47_v13 }
  0xb2   :  { %105 = vrcp.f32 %v45_v15  ;;  %v44_v16 = vpop.xlane.xlu1 %43 }
  0xb3   :  { %v48_v17 = vadd.f32 1.0, %v44_v16  ;;  %v40_v18 = vpop.xlane.xlu0 %39 }
  0xb4   :  { %v46_v19 = vadd.f32 1.0, %v40_v18 }
  0xb5   :  { %107 = vrcp.f32 %v48_v17 }
  0xb6   :  { %109 = vrcp.f32 %v46_v19 }
  0xbb   :  { %v104_v20 = vpop.eup %103 }
  0xbc   :  { %v106_v21 = vpop.eup %105  ;;  %v63_v22 = vsub.f32 1.0, %v104_v20  ;;  %v55_v23 = vmul.f32 %v104_v20, %v96_v8 }
  0xbd   :  { %v61_v24 = vsub.f32 1.0, %v106_v21  ;;  %v53_v25 = vmul.f32 %v106_v21, %v98_v9 }
  0xbe   :  { %68 = vst.msk [vmem:[%s226_s2 + $0x10] sm:$0xff] %vm65_vm0, %v63_v22  ;;  %59 = vst [vmem:[#allocation5 + $0x10] sm:$0xff] %v55_v23 }
  0xbf   :  { %v108_v26 = vpop.eup %107  ;;  %66 = vst.msk [vmem:[%s226_s2] sm:$0xff] %vm65_vm0, %v61_v24  ;;  %57 = vst [vmem:[#allocation5] sm:$0xff] %v53_v25 }
  0xc0   :  { %v110_v27 = vpop.eup %109  ;;  %v64_v28 = vsub.f32 1.0, %v108_v26  ;;  %v56_v29 = vmul.f32 %v108_v26, %v100_v10 }
  0xc1   :  { %v62_v30 = vsub.f32 1.0, %v110_v27  ;;  %v54_v31 = vmul.f32 %v110_v27, %v102_v11 }
  0xc2   :  { %69 = vst.msk [vmem:[%s226_s2 + $0x18] sm:$0xff] %vm65_vm0, %v64_v28  ;;  %60 = vst [vmem:[#allocation5 + $0x18] sm:$0xff] %v56_v29 }
  0xc3   :  { %67 = vst.msk [vmem:[%s226_s2 + $0x8] sm:$0xff] %vm65_vm0, %v62_v30  ;;  %58 = vst [vmem:[#allocation5 + $0x8] sm:$0xff] %v54_v31 }
  0xc4   :  { %144 = shalt.err (!%p141_p12)
}
  0xc5   :  { %s145_s7 = scalar_lea.hbm %s225_s1, 512 }
  0xc6   :  { %p146_p13 = scmp.ne.s32.totalorder %s225_s1, %s145_s7  ;;  %p149_p0 = scmp.lt.u32.totalorder %s145_s7, %s225_s1 }
  0xc8   :  { %p151_p1 = pnand %p149_p0, %p146_p13 }
  0xca   :  { %154 = shalt.err (!%p151_p1)
}
  0xcb   :  { %81 = dma.vmem_to_hbm [thread:$0]  %s76_s25, 512, %s225_s1, [#allocation4], %s160_s19, %s160_s19, %s161_s20  }
  0xcc   :  { %157 = dma.done.wait [#allocation4], 512  }
  0xcd   :  { %158 = vsyncadd [#allocation4], 4294966784 }
  0xce   :  { %89 = vsyncpa [#allocation3], 1 }
  0xcf   :  { %90 = vsyncpa [#allocation4], 1 }

</bundles_post_ra>
